<compile_context>
chip_gen: v6e
topology: v6e:2x2x1
jax: 0.10.0
libtpu: 0.0.40
codegen_flags: <defaults>
</compile_context>

<pallas_src>
import jax
import jax.numpy as jnp
from jax import lax
from jax.experimental import pallas as pl
from jax.experimental.pallas import tpu as pltpu

BN_EPS = 1e-5


def _mlp_kernel(u_ref, i_ref, w1u_ref, w1i_ref, b1_ref, w2_ref, b2_ref, out_ref):
    # u: (TB, Du), i: (TB, Di)  -- streaming dtype (bf16 preferred)
    # w1u: (Du, H), w1i: (Di, H) -- BN-folded, same dtype as the streams
    # b1: (1, H) f32, w2: (8, H) f32 (row replicated x8), b2: (1, 1) f32
    # out: (1, TB) f32 -- lane-dense output row

    # Linear 1 (BN already folded). Two MXU matmuls -> concat never materialized.
    h = jnp.dot(u_ref[...], w1u_ref[...], preferred_element_type=jnp.float32)
    h = h + jnp.dot(i_ref[...], w1i_ref[...], preferred_element_type=jnp.float32)
    h = h + b1_ref[...]

    # ReLU (VPU); Dropout is identity in eval mode.
    h = jnp.maximum(h, 0.0)

    # Output layer (out_features=1): y_row = w2 . h^T, contraction over H on the MXU.
    # Result (8, TB) is already lane-dense; keep row 0 (all 8 rows are identical).
    y = lax.dot_general(w2_ref[...], h, (((1,), (1,)), ((), ())),
                        preferred_element_type=jnp.float32)
    out_ref[...] = (y[0:1, :] + b2_ref[...]).astype(out_ref.dtype)


def prepare_params(params, user_dim, *, compute_dtype=jnp.bfloat16):
    """Fold BatchNorm1d (eval / running stats) into the first linear.

    Call once per checkpoint (hoisted out of the per-batch serving path).
    """
    scale = params["gamma"] * lax.rsqrt(params["running_var"] + BN_EPS)      # (H,)
    b1 = (params["b1"] - params["running_mean"]) * scale + params["beta"]     # (H,)
    w1 = params["w1"] * scale[None, :]                                        # (D, H)
    H = w1.shape[1]
    w2_row = params["w2"].reshape(1, H).astype(jnp.float32)
    return {
        "w1u": w1[:user_dim].astype(compute_dtype),
        "w1i": w1[user_dim:].astype(compute_dtype),
        "b1": b1.reshape(1, H).astype(jnp.float32),
        # Replicate w2 to 8 rows so the second matmul has an MXU-friendly M=8 LHS.
        "w2": jnp.broadcast_to(w2_row, (8, H)).astype(jnp.float32),
        "b2": params["b2"].reshape(1, 1).astype(jnp.float32),
    }


def mlp_forward(user_emb, item_emb, kparams, *, tile_b=8192):
    """user_emb: (N, Du), item_emb: (N, Di). Returns (N, 1) float32.

    tile_b: batch rows per grid step. Default 8192; sweep 4096-16384. Keep it a
    multiple of 128 (lane-dense output block). VMEM per step is ~1 KB/row, so even
    16384 fits v7x's smaller VMEM under the 48 MiB limit set below.
    """
    N, Du = user_emb.shape
    Ni, Di = item_emb.shape
    assert Ni == N, "user_emb / item_emb batch mismatch"
    H = kparams["w1u"].shape[1]

    # Stream embeddings in the kernel compute dtype (no-op if already matching,
    # e.g. native bf16 embeddings).
    dtype = kparams["w1u"].dtype
    user_emb = user_emb.astype(dtype)
    item_emb = item_emb.astype(dtype)

    # Tile selection: multiple of 128; small batches use a single full-extent block.
    tile_b = max(128, (int(tile_b) // 128) * 128)
    if N <= tile_b:
        tile_b = N                      # block == full array dims (always legal)
        grid = (1,)
    else:
        grid = (pl.cdiv(N, tile_b),)    # partial last block handled by clamping

    in_specs = [
        pl.BlockSpec((tile_b, Du), lambda b: (b, 0)),   # user embeddings (tiled)
        pl.BlockSpec((tile_b, Di), lambda b: (b, 0)),   # item embeddings (tiled)
        pl.BlockSpec((Du, H), lambda b: (0, 0)),        # w1 user half (resident)
        pl.BlockSpec((Di, H), lambda b: (0, 0)),        # w1 item half (resident)
        pl.BlockSpec((1, H), lambda b: (0, 0)),         # b1 (BN-folded)
        pl.BlockSpec((8, H), lambda b: (0, 0)),         # w2 replicated rows
        pl.BlockSpec((1, 1), lambda b: (0, 0)),         # b2
    ]
    out_spec = pl.BlockSpec((1, tile_b), lambda b: (0, b))   # lane-dense row

    bytes_accessed = (
        user_emb.size * user_emb.dtype.itemsize
        + item_emb.size * item_emb.dtype.itemsize
        + sum(int(v.size) * v.dtype.itemsize for v in kparams.values())
        + N * 4)
    cost = pl.CostEstimate(
        flops=2 * N * (Du + Di) * H + 2 * N * H,
        transcendentals=0,
        bytes_accessed=int(bytes_accessed))

    out_row = pl.pallas_call(
        _mlp_kernel,
        out_shape=jax.ShapeDtypeStruct((1, N), jnp.float32),
        grid=grid,
        in_specs=in_specs,
        out_specs=out_spec,
        compiler_params=pltpu.CompilerParams(
            dimension_semantics=("parallel",),        # shard steps across TCs (v7x)
            vmem_limit_bytes=48 * 1024 * 1024),       # < 64 MiB physical on v7x
        cost_estimate=cost,
    )(user_emb, item_emb,
      kparams["w1u"], kparams["w1i"], kparams["b1"], kparams["w2"], kparams["b2"])

    return out_row.reshape(N, 1)


def init_params(key, input_dim, hidden_dim):
    """Deterministic init mimicking PyTorch defaults (uniform +/- 1/sqrt(fan_in))."""
    k1, k2, k3, k4 = jax.random.split(key, 4)
    lim1 = 1.0 / jnp.sqrt(input_dim)
    lim2 = 1.0 / jnp.sqrt(hidden_dim)
    return {
        # Linear 1: PyTorch weight is (out, in); stored transposed (in, out).
        "w1": jax.random.uniform(k1, (input_dim, hidden_dim), jnp.float32, -lim1, lim1),
        "b1": jax.random.uniform(k2, (hidden_dim,), jnp.float32, -lim1, lim1),
        # BatchNorm1d defaults.
        "gamma": jnp.ones((hidden_dim,), jnp.float32),
        "beta": jnp.zeros((hidden_dim,), jnp.float32),
        "running_mean": jnp.zeros((hidden_dim,), jnp.float32),
        "running_var": jnp.ones((hidden_dim,), jnp.float32),
        # Output Linear: (in=hidden, out=1).
        "w2": jax.random.uniform(k3, (hidden_dim, 1), jnp.float32, -lim2, lim2),
        "b2": jax.random.uniform(k4, (1,), jnp.float32, -lim2, lim2),
    }


def mlp_reference(user_emb, item_emb, params):
    """Unfused pure-JAX f32 reference (eval-mode BN, identity dropout)."""
    x = jnp.concatenate([user_emb, item_emb], axis=-1)
    h = x @ params["w1"] + params["b1"]
    h = (h - params["running_mean"]) / jnp.sqrt(params["running_var"] + BN_EPS)
    h = h * params["gamma"] + params["beta"]
    h = jnp.maximum(h, 0.0)
    return h @ params["w2"] + params["b2"]


if __name__ == "__main__":
    key = jax.random.PRNGKey(0)
    k_u, k_i, k_p, k_u2, k_i2 = jax.random.split(key, 5)

    user_dim, item_dim, hidden = 16, 16, 128
    params = init_params(k_p, user_dim + item_dim, hidden)
    kparams = prepare_params(params, user_dim, compute_dtype=jnp.bfloat16)

    # Small case: single full-extent block.
    batch = 16
    u = jax.random.normal(k_u, (batch, user_dim), jnp.bfloat16)
    i = jax.random.normal(k_i, (batch, item_dim), jnp.bfloat16)
    out = jax.block_until_ready(mlp_forward(u, i, kparams))
    ref = mlp_reference(u.astype(jnp.float32), i.astype(jnp.float32), params)
    assert out.shape == (batch, 1)
    assert jnp.allclose(out, ref, atol=3e-2, rtol=3e-2), "mismatch vs reference (small)"

    # Ragged multi-block case: grid of 4 with a partial last block (no wrapper pad),
    # exercises clamped tail reads + masked tail writes and the parallel grid axis.
    batch2 = 1000
    u2 = jax.random.normal(k_u2, (batch2, user_dim), jnp.bfloat16)
    i2 = jax.random.normal(k_i2, (batch2, item_dim), jnp.bfloat16)
    out2 = jax.block_until_ready(mlp_forward(u2, i2, kparams, tile_b=256))
    ref2 = mlp_reference(u2.astype(jnp.float32), i2.astype(jnp.float32), params)
    assert out2.shape == (batch2, 1)
    assert jnp.allclose(out2, ref2, atol=3e-2, rtol=3e-2), "mismatch vs reference (ragged)"

    print("KERNEL_OK")
</pallas_src>

<mosaic_0001>
module attributes {stable_mosaic.version = 11 : i64} {
  func.func @_mlp_kernel(%arg0: i32, %arg1: memref<16x16xbf16, #tpu.memory_space<vmem>>, %arg2: memref<16x16xbf16, #tpu.memory_space<vmem>>, %arg3: memref<16x128xbf16, #tpu.memory_space<vmem>>, %arg4: memref<16x128xbf16, #tpu.memory_space<vmem>>, %arg5: memref<1x128xf32, #tpu.memory_space<vmem>>, %arg6: memref<8x128xf32, #tpu.memory_space<vmem>>, %arg7: memref<1x1xf32, #tpu.memory_space<vmem>>, %arg8: memref<1x16xf32, #tpu.memory_space<vmem>>) attributes {dimension_semantics = [#tpu.dimension_semantics<parallel>], iteration_bounds = array<i64: 1>, scalar_prefetch = 0 : i64, scratch_operands = 0 : i64, tpu.core_type = #tpu.core_type<tc>, window_params = [{transform_indices = @transform_0, window_bounds = array<i64: 16, 16>}, {transform_indices = @transform_1, window_bounds = array<i64: 16, 16>}, {pipeline_mode = #tpu.pipeline_mode<synchronous>, transform_indices = @transform_2, window_bounds = array<i64: 16, 128>}, {pipeline_mode = #tpu.pipeline_mode<synchronous>, transform_indices = @transform_3, window_bounds = array<i64: 16, 128>}, {pipeline_mode = #tpu.pipeline_mode<synchronous>, transform_indices = @transform_4, window_bounds = array<i64: 1, 128>}, {pipeline_mode = #tpu.pipeline_mode<synchronous>, transform_indices = @transform_5, window_bounds = array<i64: 8, 128>}, {pipeline_mode = #tpu.pipeline_mode<synchronous>, transform_indices = @transform_6, window_bounds = array<i64: 1, 1>}, {transform_indices = @transform_7, window_bounds = array<i64: 1, 16>}]} {
    %c0 = arith.constant 0 : index
    %c0_0 = arith.constant 0 : index
    %0 = vector.load %arg1[%c0, %c0_0] : memref<16x16xbf16, #tpu.memory_space<vmem>>, vector<16x16xbf16>
    %c0_1 = arith.constant 0 : index
    %c0_2 = arith.constant 0 : index
    %1 = vector.load %arg3[%c0_1, %c0_2] : memref<16x128xbf16, #tpu.memory_space<vmem>>, vector<16x128xbf16>
    %cst = arith.constant dense<0.000000e+00> : vector<16x128xf32>
    %2 = tpu.matmul %0, %1, %cst {dimension_numbers = #tpu.dot_dimension_numbers<[1], [0], [0], [1], [0, 0, 1, 1], [], []>} : vector<16x16xbf16>, vector<16x128xbf16>, vector<16x128xf32> -> vector<16x128xf32>
    %c0_3 = arith.constant 0 : index
    %c0_4 = arith.constant 0 : index
    %3 = vector.load %arg2[%c0_3, %c0_4] : memref<16x16xbf16, #tpu.memory_space<vmem>>, vector<16x16xbf16>
    %c0_5 = arith.constant 0 : index
    %c0_6 = arith.constant 0 : index
    %4 = vector.load %arg4[%c0_5, %c0_6] : memref<16x128xbf16, #tpu.memory_space<vmem>>, vector<16x128xbf16>
    %cst_7 = arith.constant dense<0.000000e+00> : vector<16x128xf32>
    %5 = tpu.matmul %3, %4, %cst_7 {dimension_numbers = #tpu.dot_dimension_numbers<[1], [0], [0], [1], [0, 0, 1, 1], [], []>} : vector<16x16xbf16>, vector<16x128xbf16>, vector<16x128xf32> -> vector<16x128xf32>
    %6 = arith.addf %2, %5 : vector<16x128xf32>
    %c0_8 = arith.constant 0 : index
    %c0_9 = arith.constant 0 : index
    %7 = vector.load %arg5[%c0_8, %c0_9] : memref<1x128xf32, #tpu.memory_space<vmem>>, vector<1x128xf32>
    %8 = vector.broadcast %7 : vector<1x128xf32> to vector<16x128xf32>
    %9 = arith.addf %6, %8 : vector<16x128xf32>
    %cst_10 = arith.constant 0.000000e+00 : f32
    %10 = vector.broadcast %cst_10 : f32 to vector<16x128xf32>
    %11 = arith.maximumf %9, %10 : vector<16x128xf32>
    %c0_11 = arith.constant 0 : index
    %c0_12 = arith.constant 0 : index
    %12 = vector.load %arg6[%c0_11, %c0_12] : memref<8x128xf32, #tpu.memory_space<vmem>>, vector<8x128xf32>
    %cst_13 = arith.constant dense<0.000000e+00> : vector<8x16xf32>
    %13 = tpu.matmul %12, %11, %cst_13 {dimension_numbers = #tpu.dot_dimension_numbers<[1], [1], [0], [0], [0, 0, 1, 0], [], []>} : vector<8x128xf32>, vector<16x128xf32>, vector<8x16xf32> -> vector<8x16xf32>
    %14 = vector.extract_strided_slice %13 {offsets = [0, 0], sizes = [1, 16], strides = [1, 1]} : vector<8x16xf32> to vector<1x16xf32>
    %c0_14 = arith.constant 0 : index
    %c0_15 = arith.constant 0 : index
    %15 = vector.load %arg7[%c0_14, %c0_15] : memref<1x1xf32, #tpu.memory_space<vmem>>, vector<1x1xf32>
    %16 = vector.broadcast %15 : vector<1x1xf32> to vector<1x16xf32>
    %17 = arith.addf %14, %16 : vector<1x16xf32>
    %c0_16 = arith.constant 0 : index
    %c0_17 = arith.constant 0 : index
    %18 = vector.load %arg8[%c0_16, %c0_17] : memref<1x16xf32, #tpu.memory_space<vmem>>, vector<1x16xf32>
    tpu.vector_store %arg8[%c0_16, %c0_17], %17 {strides = array<i32>} : memref<1x16xf32, #tpu.memory_space<vmem>>, vector<1x16xf32>,
    return
  }
  func.func @transform_0(%arg0: i32) -> (i32, i32) {
    %c0_i32 = arith.constant 0 : i32
    %c0_i32_0 = arith.constant 0 : i32
    return %arg0, %c0_i32 : i32, i32
  }
  func.func @transform_1(%arg0: i32) -> (i32, i32) {
    %c0_i32 = arith.constant 0 : i32
    %c0_i32_0 = arith.constant 0 : i32
    return %arg0, %c0_i32 : i32, i32
  }
  func.func @transform_2(%arg0: i32) -> (i32, i32) {
    %c0_i32 = arith.constant 0 : i32
    %c0_i32_0 = arith.constant 0 : i32
    %c0_i32_1 = arith.constant 0 : i32
    return %c0_i32, %c0_i32_0 : i32, i32
  }
  func.func @transform_3(%arg0: i32) -> (i32, i32) {
    %c0_i32 = arith.constant 0 : i32
    %c0_i32_0 = arith.constant 0 : i32
    %c0_i32_1 = arith.constant 0 : i32
    return %c0_i32, %c0_i32_0 : i32, i32
  }
  func.func @transform_4(%arg0: i32) -> (i32, i32) {
    %c0_i32 = arith.constant 0 : i32
    %c0_i32_0 = arith.constant 0 : i32
    %c0_i32_1 = arith.constant 0 : i32
    return %c0_i32, %c0_i32_0 : i32, i32
  }
  func.func @transform_5(%arg0: i32) -> (i32, i32) {
    %c0_i32 = arith.constant 0 : i32
    %c0_i32_0 = arith.constant 0 : i32
    %c0_i32_1 = arith.constant 0 : i32
    return %c0_i32, %c0_i32_0 : i32, i32
  }
  func.func @transform_6(%arg0: i32) -> (i32, i32) {
    %c0_i32 = arith.constant 0 : i32
    %c0_i32_0 = arith.constant 0 : i32
    %c0_i32_1 = arith.constant 0 : i32
    return %c0_i32, %c0_i32_0 : i32, i32
  }
  func.func @transform_7(%arg0: i32) -> (i32, i32) {
    %c0_i32 = arith.constant 0 : i32
    %c0_i32_0 = arith.constant 0 : i32
    return %c0_i32, %arg0 : i32, i32
  }
}

</mosaic_0001>

<bundles_post_ra>
// kernel: tpu_custom_call.1
= control target key start
LH: loop header
LB: loop body
LE: loop exit
PB: predicated region body
PF: predicated region fallthrough
CT: control target
= control target key end

     0   :  { %s558_s0 = inlined_call_operand.hbm [shape: bf16[16,16], index: 0, kind: input, shape index: {}]   ;;  %s559_s1 = inlined_call_operand.hbm [shape: bf16[16,16], index: 1, kind: input, shape index: {}]   ;;  %s560_s2 = inlined_call_operand.hbm [shape: bf16[16,128], index: 2, kind: input, shape index: {}]   ;;  %s561_s3 = inlined_call_operand.hbm [shape: bf16[16,128], index: 3, kind: input, shape index: {}]   ;;  %s562_s4 = inlined_call_operand.vmem [shape: f32[1,128], index: 4, kind: input, shape index: {}]   ;;  %s563_s5 = inlined_call_operand.vmem [shape: f32[8,128], index: 5, kind: input, shape index: {}]   ;;  %s564_s6 = inlined_call_operand.<no memory space> [shape: f32[1,1], index: 6, kind: input, shape index: {}]   ;;  %s565_s7 = inlined_call_operand.hbm [shape: f32[1,16], index: 7, kind: output, shape index: {}]  }
   0x1   :  { %v12_v0 = vstv %s564_s6 }
   0x2   :  { %13 = vst [vmem:[#allocation2] sm:$0x1] %v12_v0 }
   0x3   :  { %14 = vsyncpa [#allocation4], 0 }
   0x4   :  { %15 = vsyncpa [#allocation7], 0 }
   0x5   :  { %16 = vsyncpa [#allocation10], 0 }
   0x6   :  { %17 = vsyncpa [#allocation5], 0  ;;  %s472_s26 = smov [#allocation6]   ;;  %s473_s28 = smov [#allocation3]  }
   0x7   :  { %s35_s27 = sshll.u32 %s472_s26, 4  ;;  %s23_s29 = sshll.u32 %s473_s28, 4  ;;  %s36_s27 = int_to_ptr.vmem [resolvable:$true] %s35_s27  ;;  %s24_s29 = int_to_ptr.vmem [resolvable:$true] %s23_s29 }
   0x8   :  { %s372_s30 = scalar_lea.vmem %s36_s27, 128  ;;  %p377_p1 = scmp.lt.s32.totalorder %s36_s27, %s36_s27 }
   0x9   :  { %p373_p0 = scmp.ne.s32.totalorder %s36_s27, %s372_s30  ;;  %p378_p2 = scmp.lt.s32.totalorder %s372_s30, %s372_s30 }
   0xb   :  { %p379_p3 = por %p378_p2, %p377_p1 }
   0xd   :  { %p380_p4 = pnand %p379_p3, %p373_p0 }
   0xf   :  { %383 = shalt.err (!%p380_p4)
}
  0x10   :  { %s474_s8 = smov 64   ;;  %s475_s6 = smov 4  }
  0x11   :  { %41 = dma.hbm_to_vmem [thread:$0]  %s559_s1, 128, %s36_s27, [#allocation7], %s474_s8, %s474_s8, %s475_s6  }
  0x12   :  { %s392_s11 = scalar_lea.vmem %s24_s29, 128  ;;  %p397_p6 = scmp.lt.s32.totalorder %s24_s29, %s24_s29 }
  0x13   :  { %p393_p5 = scmp.ne.s32.totalorder %s24_s29, %s392_s11  ;;  %p398_p7 = scmp.lt.s32.totalorder %s392_s11, %s392_s11 }
  0x15   :  { %p399_p8 = por %p398_p7, %p397_p6 }
  0x17   :  { %p400_p9 = pnand %p399_p8, %p393_p5 }
  0x19   :  { %403 = shalt.err (!%p400_p9)
}
  0x1a   :  { %29 = dma.hbm_to_vmem [thread:$0]  %s558_s0, 128, %s24_s29, [#allocation4], %s474_s8, %s474_s8, %s475_s6  }
  0x1b   :  { %s476_s14 = smov [#allocation8]   ;;  %s477_s16 = smov [#allocation9]  }
  0x1c   :  { %s47_s15 = sshll.u32 %s476_s14, 4  ;;  %s59_s17 = sshll.u32 %s477_s16, 4  ;;  %s48_s15 = int_to_ptr.vmem [resolvable:$true] %s47_s15  ;;  %s60_s17 = int_to_ptr.vmem [resolvable:$true] %s59_s17 }
  0x1d   :  { %s412_s1 = scalar_lea.vmem %s48_s15, 128  ;;  %p417_p11 = scmp.lt.s32.totalorder %s48_s15, %s48_s15 }
  0x1e   :  { %p413_p10 = scmp.ne.s32.totalorder %s48_s15, %s412_s1  ;;  %p418_p12 = scmp.lt.s32.totalorder %s412_s1, %s412_s1 }
  0x20   :  { %p419_p13 = por %p418_p12, %p417_p11 }
  0x22   :  { %p420_p0 = pnand %p419_p13, %p413_p10 }
  0x24   :  { %423 = shalt.err (!%p420_p0)
}
  0x25   :  { %53 = dma.hbm_to_vmem [thread:$0]  %s560_s2, 128, %s48_s15, [#allocation7], %s474_s8, %s474_s8, %s475_s6  }
  0x26   :  { %s432_s0 = scalar_lea.vmem %s60_s17, 128  ;;  %p437_p2 = scmp.lt.s32.totalorder %s60_s17, %s60_s17 }
  0x27   :  { %p433_p1 = scmp.ne.s32.totalorder %s60_s17, %s432_s0  ;;  %p438_p3 = scmp.lt.s32.totalorder %s432_s0, %s432_s0 }
  0x29   :  { %p439_p4 = por %p438_p3, %p437_p2 }
  0x2b   :  { %p440_p5 = pnand %p439_p4, %p433_p1 }
  0x2d   :  { %443 = shalt.err (!%p440_p5)
}
  0x2e   :  { %65 = dma.hbm_to_vmem [thread:$0]  %s561_s3, 128, %s60_s17, [#allocation10], %s474_s8, %s474_s8, %s475_s6  }
  0x2f   :  { %464 = dma.done.wait [#allocation4], 128  }
  0x30   :  { %465 = vsyncadd [#allocation4], 4294967168 }
  0x31   :  { %466 = dma.done.wait [#allocation7], 256  }
  0x32   :  { %467 = vsyncadd [#allocation7], 4294967040 }
  0x33   :  { %468 = dma.done.wait [#allocation10], 128  }
  0x34   :  { %469 = vsyncadd [#allocation10], 4294967168  ;;  %v478_v1 = vmov 0.0   ;;  %vm479_vm0 = vmmov 0   ;;  %v360_v2 = vld [vmem:[#allocation9] sm:$0xff]   ;;  %v361_v3 = vld [vmem:[#allocation8] sm:$0xff]   ;;  %v292_v24 = vlaneseq }
  0x35   :  { %330 = vmatprep.subr.bf16.mxu0 %v478_v1  ;;  %336 = vmatprep.subr.bf16.mxu1 %v478_v1  ;;  %v362_v4 = vld [vmem:[#allocation6] sm:$0xff]   ;;  %vm104_vm1 = vcmask 130048   ;;  %v363_v5 = vld [vmem:[#allocation3] sm:$0xff]   ;;  %v286_v6 = vld [vmem:[#allocation2] sm:$0x1]  ;;  %v480_v7 = vmov 0  }
  0x36   :  { %332 = vmatprep.mubr.msk.bf16.mxu0 %vm479_vm0, %v478_v1  ;;  %338 = vmatprep.mubr.msk.bf16.mxu1 %vm479_vm0, %v478_v1  ;;  %v322_v17 = vld [vmem:[%s562_s4] ss:$0 sm:$0xff]  ;;  %v293_v25 = vshrl.u32 %v292_v24, 7  ;;  %s481_s24 = smov [#allocation11]   ;;  %vm297_vm2 = vcmask 122880  }
  0x37   :  { %331 = vmatpush3.bf16.msra.mxu0 %v360_v2  ;;  %337 = vmatpush3.bf16.msra.mxu1 %v361_v3  ;;  %v215_v23 = vld [vmem:[%s563_s5] sm:$0xff]  ;;  %s305_s4 = sshll.u32 %s481_s24, 4  ;;  %s306_s4 = int_to_ptr.vmem [resolvable:$true] %s305_s4 }
  0x38   :  { %342 = vmatprep.subr.mxu0 %v478_v1  ;;  %359 = vset.pattern.permute.xlu0 %v480_v7  ;;  %v294_v26 = vsub.s32 0, %v293_v25  ;;  %s444_s25 = scalar_lea.vmem %s306_s4, 16  ;;  %s448_s26 = scalar_lea.vmem %s306_s4, 32 }
  0x39   :  { %289 = vperm.xlu0 %359, %v286_v6   ;;  %p445_p6 = scmp.ne.s32.totalorder %s306_s4, %s444_s25  ;;  %p449_p7 = scmp.lt.s32.totalorder %s306_s4, %s306_s4 }
  0x3a   :  { %333 = vmatmul.mubr.msk.bf16.vlgmr.msra.gmra.mxu0 %vm104_vm1, %v362_v4  ;;  %339 = vmatmul.mubr.msk.bf16.vlgmr.msra.gmra.mxu1 %vm104_vm1, %v363_v5  ;;  %p450_p8 = scmp.lt.s32.totalorder %s448_s26, %s444_s25 }
  0x3b   :  { %346 = vmatprep.mubr.msk.f32.mxu0 %vm479_vm0, %v478_v1 }
  0x3c   :  { %p451_p9 = por %p450_p8, %p449_p7 }
  0x3e   :  { %p452_p10 = pnand %p451_p9, %p445_p6 }
  0xb4   :  { %v290_v27 = vpop.permute.xlu0 %289 }
  0xb5   :  { %v295_v28 = vrot.slane %v290_v27, %v294_v26 }
  0xfa   :  { %v142_v8 = vpop.f32.mrf.mxu0  ;;  %v197_v9 = vpop.f32.mrf.mxu1 }
  0xfb   :  { %v198_v14 = vadd.f32 %v197_v9, %v142_v8 }
  0xfc   :  { %v334_v10 = vpop.f32.mrf.mxu0  ;;  %v340_v11 = vpop.f32.mrf.mxu1 }
  0xfd   :  { %v211_v20 = vadd.f32 %v322_v17, %v198_v14 }
  0xfe   :  { %v145_v12 = vpop.f32.mrf.mxu0  ;;  %v200_v13 = vpop.f32.mrf.mxu1 }
  0xff   :  { %v201_v15 = vadd.f32 %v200_v13, %v145_v12  ;;  %v213_v22 = vmax.f32 %v211_v20, 0.0 }
 0x100   :  { %v335_v16 = vpop.f32.mrf.mxu0  ;;  %v341_v18 = vpop.f32.mrf.mxu1 }
 0x101   :  { %v212_v19 = vadd.f32 %v322_v17, %v201_v15 }
 0x103   :  { %v214_v21 = vmax.f32 %v212_v19, 0.0 }
 0x105   :  { %343 = vmatpush3.xpose.msra.mxu0 %v214_v21 }
 0x106   :  { %344 = vmatprep.subr.mxu0 %v478_v1 }
 0x109   :  { %345 = vmatpush3.xpose.msra.mxu0 %v213_v22 }
 0x10c   :  { %347 = vmatmul.mubr.f32.vlgmr.msra.gmra.mxu0 %v215_v23 }
 0x1cc   :  { %v282_v29 = vpop.f32.mrf.mxu0 }
 0x1cd   :  { %v296_v30 = vadd.f32 %v295_v28, %v282_v29 }
 0x1ce   :  { %v348_v31 = vpop.f32.mrf.mxu0 }
 0x1cf   :  { %298 = vst.msk [vmem:[#allocation11] sm:$0x1] %vm297_vm2, %v296_v30 }
 0x1d0   :  { %455 = shalt.err (!%p452_p10)
}
 0x1d1   :  { %308 = dma.vmem_to_hbm [thread:$0]  %s306_s4, 16, %s565_s7, [#allocation5]  }
 0x1d2   :  { %470 = dma.done.wait [#allocation5], 16  }
 0x1d3   :  { %471 = vsyncadd [#allocation5], 4294967280 }
 0x1d4   :  { %312 = vsyncpa [#allocation4], 1 }
 0x1d5   :  { %313 = vsyncpa [#allocation7], 1 }
 0x1d6   :  { %314 = vsyncpa [#allocation10], 1 }
 0x1d7   :  { %315 = vsyncpa [#allocation5], 1 }

</bundles_post_ra>
